<compile_context>
chip_gen: v6e
topology: v6e:2x2x1
jax: 0.10.0
libtpu: 0.0.40
codegen_flags: <defaults>
</compile_context>

<pallas_src>
import jax
import jax.numpy as jnp
import numpy as np
from jax.experimental import pallas as pl
from jax.experimental.pallas import tpu as pltpu


def samp_kernel(hx_ref, hy_ref, w_ref, b_ref, out_ref):
    gated = hx_ref[...] * hy_ref[...]                         # VPU elementwise, stays in VMEM
    out_ref[...] = (
        jnp.dot(gated, w_ref[...],
                preferred_element_type=jnp.float32,
                precision=jax.lax.Precision.HIGHEST)          # single tiny MXU matmul
        + b_ref[...]                                          # [1, out] broadcasts over batch
    ).astype(out_ref.dtype)


def samp_forward(hx, hy, w, b, *, block_b=128):
    """hx, hy: [B, latent_hid].  w: [2*qz_dim, latent_hid] (torch Linear layout).  b: [2*qz_dim]."""
    B, latent = hx.shape
    out_dim = w.shape[0]
    w_t = jnp.transpose(w)                                    # [latent_hid, 2*qz_dim]
    b_row = b.reshape(1, out_dim)

    bb = min(block_b, B)
    assert B % bb == 0, "batch must be divisible by the batch block"
    grid = (B // bb,)

    return pl.pallas_call(
        samp_kernel,
        out_shape=jax.ShapeDtypeStruct((B, out_dim), jnp.float32),
        grid_spec=pltpu.PrefetchScalarGridSpec(
            num_scalar_prefetch=0,
            grid=grid,
            in_specs=[
                pl.BlockSpec((bb, latent), lambda i: (i, 0)),       # hx tile
                pl.BlockSpec((bb, latent), lambda i: (i, 0)),       # hy tile
                pl.BlockSpec((latent, out_dim), lambda i: (0, 0)),  # W^T (resident)
                pl.BlockSpec((1, out_dim), lambda i: (0, 0)),       # bias row (resident)
            ],
            out_specs=pl.BlockSpec((bb, out_dim), lambda i: (i, 0)),
        ),
        compiler_params=pltpu.CompilerParams(
            dimension_semantics=("parallel",)),                # batch axis: megacore-shardable
    )(hx, hy, w_t, b_row)


if __name__ == "__main__":
    # samp(latent_hid=32, qz_dim=64): Linear(32 -> 128) applied to hx * hy.
    B, latent_hid, qz_dim = 2, 32, 64

    key = jax.random.PRNGKey(0)
    k_hx, k_hy, k_w, k_b = jax.random.split(key, 4)

    bound = 1.0 / np.sqrt(latent_hid)          # nn.Linear default init bound
    w = jax.random.uniform(k_w, (2 * qz_dim, latent_hid), jnp.float32, -bound, bound)
    b = jax.random.uniform(k_b, (2 * qz_dim,), jnp.float32, -bound, bound)
    hx = jax.random.normal(k_hx, (B, latent_hid), jnp.float32)
    hy = jax.random.normal(k_hy, (B, latent_hid), jnp.float32)

    qz = samp_forward(hx, hy, w, b)
    jax.block_until_ready(qz)

    # pure-numpy reference: (hx * hy) @ W.T + b
    ref = ((np.asarray(hx, np.float64) * np.asarray(hy, np.float64))
           @ np.asarray(w, np.float64).T
           + np.asarray(b, np.float64))

    assert qz.shape == (B, 2 * qz_dim)
    assert np.allclose(np.asarray(qz), ref.astype(np.float32), rtol=1e-4, atol=1e-4)

    print("KERNEL_OK")
</pallas_src>

<mosaic_0001>
module attributes {stable_mosaic.version = 11 : i64} {
  func.func @samp_kernel(%arg0: i32, %arg1: memref<2x32xf32, #tpu.memory_space<vmem>>, %arg2: memref<2x32xf32, #tpu.memory_space<vmem>>, %arg3: memref<32x128xf32, #tpu.memory_space<vmem>>, %arg4: memref<1x128xf32, #tpu.memory_space<vmem>>, %arg5: memref<2x128xf32, #tpu.memory_space<vmem>>) attributes {dimension_semantics = [#tpu.dimension_semantics<parallel>], iteration_bounds = array<i64: 1>, scalar_prefetch = 0 : i64, scratch_operands = 0 : i64, tpu.core_type = #tpu.core_type<tc>, window_params = [{transform_indices = @transform_0, window_bounds = array<i64: 2, 32>}, {transform_indices = @transform_1, window_bounds = array<i64: 2, 32>}, {pipeline_mode = #tpu.pipeline_mode<synchronous>, transform_indices = @transform_2, window_bounds = array<i64: 32, 128>}, {pipeline_mode = #tpu.pipeline_mode<synchronous>, transform_indices = @transform_3, window_bounds = array<i64: 1, 128>}, {transform_indices = @transform_4, window_bounds = array<i64: 2, 128>}]} {
    %c0 = arith.constant 0 : index
    %c0_0 = arith.constant 0 : index
    %0 = vector.load %arg1[%c0, %c0_0] : memref<2x32xf32, #tpu.memory_space<vmem>>, vector<2x32xf32>
    %c0_1 = arith.constant 0 : index
    %c0_2 = arith.constant 0 : index
    %1 = vector.load %arg2[%c0_1, %c0_2] : memref<2x32xf32, #tpu.memory_space<vmem>>, vector<2x32xf32>
    %2 = arith.mulf %0, %1 : vector<2x32xf32>
    %c0_3 = arith.constant 0 : index
    %c0_4 = arith.constant 0 : index
    %3 = vector.load %arg3[%c0_3, %c0_4] : memref<32x128xf32, #tpu.memory_space<vmem>>, vector<32x128xf32>
    %cst = arith.constant dense<0.000000e+00> : vector<2x128xf32>
    %4 = tpu.matmul %2, %3, %cst {dimension_numbers = #tpu.dot_dimension_numbers<[1], [0], [0], [1], [0, 0, 1, 1], [], []>, precision = #tpu.contract_precision<fp32>} : vector<2x32xf32>, vector<32x128xf32>, vector<2x128xf32> -> vector<2x128xf32>
    %c0_5 = arith.constant 0 : index
    %c0_6 = arith.constant 0 : index
    %5 = vector.load %arg4[%c0_5, %c0_6] : memref<1x128xf32, #tpu.memory_space<vmem>>, vector<1x128xf32>
    %6 = vector.broadcast %5 : vector<1x128xf32> to vector<2x128xf32>
    %7 = arith.addf %4, %6 : vector<2x128xf32>
    %c0_7 = arith.constant 0 : index
    %c0_8 = arith.constant 0 : index
    %8 = vector.load %arg5[%c0_7, %c0_8] : memref<2x128xf32, #tpu.memory_space<vmem>>, vector<2x128xf32>
    tpu.vector_store %arg5[%c0_7, %c0_8], %7 {strides = array<i32>} : memref<2x128xf32, #tpu.memory_space<vmem>>, vector<2x128xf32>,
    return
  }
  func.func @transform_0(%arg0: i32) -> (i32, i32) {
    %c0_i32 = arith.constant 0 : i32
    %c0_i32_0 = arith.constant 0 : i32
    return %arg0, %c0_i32 : i32, i32
  }
  func.func @transform_1(%arg0: i32) -> (i32, i32) {
    %c0_i32 = arith.constant 0 : i32
    %c0_i32_0 = arith.constant 0 : i32
    return %arg0, %c0_i32 : i32, i32
  }
  func.func @transform_2(%arg0: i32) -> (i32, i32) {
    %c0_i32 = arith.constant 0 : i32
    %c0_i32_0 = arith.constant 0 : i32
    %c0_i32_1 = arith.constant 0 : i32
    return %c0_i32, %c0_i32_0 : i32, i32
  }
  func.func @transform_3(%arg0: i32) -> (i32, i32) {
    %c0_i32 = arith.constant 0 : i32
    %c0_i32_0 = arith.constant 0 : i32
    %c0_i32_1 = arith.constant 0 : i32
    return %c0_i32, %c0_i32_0 : i32, i32
  }
  func.func @transform_4(%arg0: i32) -> (i32, i32) {
    %c0_i32 = arith.constant 0 : i32
    %c0_i32_0 = arith.constant 0 : i32
    return %arg0, %c0_i32 : i32, i32
  }
}

</mosaic_0001>

<bundles_post_ra>
// kernel: tpu_custom_call.1
= control target key start
LH: loop header
LB: loop body
LE: loop exit
PB: predicated region body
PF: predicated region fallthrough
CT: control target
= control target key end

     0   :  { %9 = vsyncpa [#allocation3], 0  ;;  %s880_s0 = inlined_call_operand.hbm [shape: f32[2,32], index: 0, kind: input, shape index: {}]   ;;  %s881_s1 = inlined_call_operand.hbm [shape: f32[2,32], index: 1, kind: input, shape index: {}]   ;;  %s882_s2 = inlined_call_operand.hbm [shape: f32[32,128], index: 2, kind: input, shape index: {}]   ;;  %s883_s3 = inlined_call_operand.vmem [shape: f32[1,128], index: 3, kind: input, shape index: {}]   ;;  %s884_s4 = inlined_call_operand.hbm [shape: f32[2,128], index: 4, kind: output, shape index: {}]  }
   0x1   :  { %10 = vsyncpa [#allocation6], 0 }
   0x2   :  { %11 = vsyncpa [#allocation4], 0  ;;  %s766_s15 = smov [#allocation5]   ;;  %s767_s17 = smov [#allocation2]  }
   0x3   :  { %s28_s16 = sshll.u32 %s766_s15, 4  ;;  %s18_s18 = sshll.u32 %s767_s17, 4  ;;  %s29_s16 = int_to_ptr.vmem [resolvable:$true] %s28_s16  ;;  %s19_s18 = int_to_ptr.vmem [resolvable:$true] %s18_s18 }
   0x4   :  { %s688_s19 = scalar_lea.vmem %s29_s16, 32  ;;  %p693_p1 = scmp.lt.s32.totalorder %s29_s16, %s29_s16 }
   0x5   :  { %p689_p0 = scmp.ne.s32.totalorder %s29_s16, %s688_s19  ;;  %p694_p2 = scmp.lt.s32.totalorder %s688_s19, %s688_s19 }
   0x7   :  { %p695_p3 = por %p694_p2, %p693_p1 }
   0x9   :  { %p696_p4 = pnand %p695_p3, %p689_p0 }
   0xb   :  { %699 = shalt.err (!%p696_p4)
}
   0xc   :  { %31 = dma.hbm_to_vmem [thread:$0]  %s881_s1, 32, %s29_s16, [#allocation6]  }
   0xd   :  { %s708_s22 = scalar_lea.vmem %s19_s18, 32  ;;  %p713_p6 = scmp.lt.s32.totalorder %s19_s18, %s19_s18 }
   0xe   :  { %p709_p5 = scmp.ne.s32.totalorder %s19_s18, %s708_s22  ;;  %p714_p7 = scmp.lt.s32.totalorder %s708_s22, %s708_s22 }
  0x10   :  { %p715_p8 = por %p714_p7, %p713_p6 }
  0x12   :  { %p716_p9 = pnand %p715_p8, %p709_p5 }
  0x14   :  { %719 = shalt.err (!%p716_p9)
}
  0x15   :  { %21 = dma.hbm_to_vmem [thread:$0]  %s880_s0, 32, %s19_s18, [#allocation3]  }
  0x16   :  { %s768_s25 = smov [#allocation7]  }
  0x17   :  { %s37_s26 = sshll.u32 %s768_s25, 4  ;;  %s38_s26 = int_to_ptr.vmem [resolvable:$true] %s37_s26 }
  0x18   :  { %s728_s27 = scalar_lea.vmem %s38_s26, 512  ;;  %p733_p11 = scmp.lt.s32.totalorder %s38_s26, %s38_s26 }
  0x19   :  { %p729_p10 = scmp.ne.s32.totalorder %s38_s26, %s728_s27  ;;  %p734_p12 = scmp.lt.s32.totalorder %s728_s27, %s728_s27 }
  0x1b   :  { %p735_p13 = por %p734_p12, %p733_p11 }
  0x1d   :  { %p736_p0 = pnand %p735_p13, %p729_p10 }
  0x1f   :  { %739 = shalt.err (!%p736_p0)
}
  0x20   :  { %s769_s1 = smov 128   ;;  %s770_s28 = smov 8  }
  0x21   :  { %43 = dma.hbm_to_vmem [thread:$0]  %s882_s2, 512, %s38_s26, [#allocation6], %s769_s1, %s769_s1, %s770_s28  }
  0x22   :  { %760 = dma.done.wait [#allocation3], 32  }
  0x23   :  { %761 = vsyncadd [#allocation3], 4294967264 }
  0x24   :  { %762 = dma.done.wait [#allocation6], 544  }
  0x25   :  { %763 = vsyncadd [#allocation6], 4294966752  ;;  %v771_v0 = vmov 0.0   ;;  %vm772_vm0 = vmmov 0   ;;  %v61_v1 = vld [vmem:[#allocation7 + $0x18] sm:$0xff]  ;;  %v60_v2 = vld [vmem:[#allocation7 + $0x10] sm:$0xff] }
  0x26   :  { %606 = vmatprep.subr.mxu0 %v771_v0  ;;  %617 = vmatprep.subr.mxu1 %v771_v0  ;;  %v59_v3 = vld [vmem:[#allocation7 + $0x8] sm:$0xff]  ;;  %v814_v4 = vand.u32 4294901760, %v61_v1  ;;  %v816_v5 = vand.u32 4294901760, %v60_v2  ;;  %v58_v7 = vld [vmem:[#allocation7] sm:$0xff]  ;;  %v55_v8 = vld [vmem:[#allocation2] sm:$0x3] }
  0x27   :  { %614 = vmatprep.mubr.msk.f32.mxu0 %vm772_vm0, %v771_v0  ;;  %625 = vmatprep.mubr.msk.f32.mxu1 %vm772_vm0, %v771_v0  ;;  %v818_v6 = vand.u32 4294901760, %v59_v3  ;;  %v820_v9 = vand.u32 4294901760, %v58_v7  ;;  %v56_v10 = vld [vmem:[#allocation5] sm:$0x3]  ;;  %vm69_vm1 = vcmask 261120   ;;  %s773_s5 = smov [#allocation8]  }
  0x28   :  { %607 = vmatpush3.msra.mxu0 %v814_v4  ;;  %v178_v11 = vsub.f32 %v61_v1, %v814_v4  ;;  %v185_v12 = vsub.f32 %v60_v2, %v816_v5  ;;  %v57_v13 = vmul.f32 %v56_v10, %v55_v8  ;;  %v575_v38 = vld [vmem:[%s883_s3] ss:$0 sm:$0xff]  ;;  %s565_s6 = sshll.u32 %s773_s5, 4  ;;  %s566_s6 = int_to_ptr.vmem [resolvable:$true] %s565_s6 }
  0x29   :  { %v192_v14 = vsub.f32 %v59_v3, %v818_v6  ;;  %608 = vmatprep.subr.mxu0 %v771_v0  ;;  %v199_v15 = vsub.f32 %v58_v7, %v820_v9  ;;  %s740_s7 = scalar_lea.vmem %s566_s6, 32  ;;  %p745_p2 = scmp.lt.s32.totalorder %s566_s6, %s566_s6 }
  0x2a   :  { %609 = vmatpush3.msra.mxu0 %v816_v5  ;;  %v179_v16 = vand.u32 4294901760, %v178_v11  ;;  %v186_v17 = vand.u32 4294901760, %v185_v12  ;;  %v71_v18 = vsel %vm69_vm1, %v57_v13, 0  ;;  %p741_p1 = scmp.ne.s32.totalorder %s566_s6, %s740_s7  ;;  %p746_p3 = scmp.lt.s32.totalorder %s740_s7, %s740_s7 }
  0x2b   :  { %v193_v19 = vand.u32 4294901760, %v192_v14  ;;  %610 = vmatprep.subr.mxu0 %v771_v0  ;;  %v830_v20 = vand.u32 4294901760, %v71_v18  ;;  %v200_v21 = vand.u32 4294901760, %v199_v15 }
  0x2c   :  { %611 = vmatpush3.msra.mxu0 %v818_v6  ;;  %v180_v22 = vsub.f32 %v178_v11, %v179_v16  ;;  %v187_v23 = vsub.f32 %v185_v12, %v186_v17  ;;  %p747_p4 = por %p746_p3, %p745_p2 }
  0x2d   :  { %v194_v24 = vsub.f32 %v192_v14, %v193_v19  ;;  %612 = vmatprep.subr.mxu0 %v771_v0  ;;  %v143_v25 = vsub.f32 %v71_v18, %v830_v20  ;;  %v201_v28 = vsub.f32 %v199_v15, %v200_v21 }
  0x2e   :  { %v181_v26 = vand.u32 4294901760, %v180_v22  ;;  %613 = vmatpush3.msra.mxu0 %v820_v9  ;;  %v188_v27 = vand.u32 4294901760, %v187_v23  ;;  %p748_p5 = pnand %p747_p4, %p741_p1 }
  0x2f   :  { %628 = vmatprep.subr.mxu0 %v771_v0  ;;  %v144_v29 = vand.u32 4294901760, %v143_v25  ;;  %v195_v30 = vand.u32 4294901760, %v194_v24  ;;  %v202_v32 = vand.u32 4294901760, %v201_v28 }
  0x30   :  { %618 = vmatpush3.msra.mxu1 %v181_v26 }
  0x31   :  { %619 = vmatprep.subr.mxu1 %v771_v0  ;;  %v145_v31 = vsub.f32 %v143_v25, %v144_v29 }
  0x32   :  { %620 = vmatpush3.msra.mxu1 %v188_v27 }
  0x33   :  { %v146_v33 = vand.u32 4294901760, %v145_v31  ;;  %621 = vmatprep.subr.mxu1 %v771_v0 }
  0x34   :  { %622 = vmatpush3.msra.mxu1 %v195_v30 }
  0x35   :  { %615 = vmatmul.mubr.f32.vlgmr.msra.gmra.mxu0 %v146_v33  ;;  %623 = vmatprep.subr.mxu1 %v771_v0 }
  0x36   :  { %629 = vmatpush3.msra.mxu0 %v178_v11  ;;  %624 = vmatpush3.msra.mxu1 %v202_v32 }
  0x37   :  { %630 = vmatprep.subr.mxu0 %v771_v0  ;;  %626 = vmatmul.mubr.f32.vlgmr.msra.gmra.mxu1 %v830_v20 }
  0x38   :  { %631 = vmatpush3.msra.mxu0 %v185_v12  ;;  %639 = vmatprep.subr.mxu1 %v771_v0 }
  0x39   :  { %632 = vmatprep.subr.mxu0 %v771_v0  ;;  %640 = vmatpush3.msra.mxu1 %v814_v4 }
  0x3a   :  { %633 = vmatpush3.msra.mxu0 %v192_v14  ;;  %636 = vmatprep.mubr.msk.f32.mxu0 %vm772_vm0, %v771_v0 }
  0x3b   :  { %634 = vmatprep.subr.mxu0 %v771_v0  ;;  %641 = vmatprep.subr.mxu1 %v771_v0 }
  0x3c   :  { %635 = vmatpush3.msra.mxu0 %v199_v15  ;;  %642 = vmatpush3.msra.mxu1 %v816_v5 }
  0x3d   :  { %637 = vmatmul.mubr.f32.vlgmr.msra.gmra.mxu0 %v143_v25  ;;  %650 = vmatprep.subr.mxu0 %v771_v0 }
  0x3e   :  { %643 = vmatprep.subr.mxu1 %v771_v0  ;;  %651 = vmatpush3.msra.mxu0 %v179_v16 }
  0x3f   :  { %644 = vmatpush3.msra.mxu1 %v818_v6  ;;  %652 = vmatprep.subr.mxu0 %v771_v0 }
  0x40   :  { %645 = vmatprep.subr.mxu1 %v771_v0  ;;  %653 = vmatpush3.msra.mxu0 %v186_v17 }
  0x41   :  { %646 = vmatpush3.msra.mxu1 %v820_v9  ;;  %647 = vmatprep.mubr.msk.f32.mxu1 %vm772_vm0, %v771_v0 }
  0x42   :  { %654 = vmatprep.subr.mxu0 %v771_v0  ;;  %648 = vmatmul.mubr.f32.vlgmr.msra.gmra.mxu1 %v144_v29 }
  0x43   :  { %655 = vmatpush3.msra.mxu0 %v193_v19  ;;  %661 = vmatprep.subr.mxu1 %v771_v0 }
  0x44   :  { %656 = vmatprep.subr.mxu0 %v771_v0  ;;  %662 = vmatpush3.msra.mxu1 %v814_v4 }
  0x45   :  { %657 = vmatpush3.msra.mxu0 %v200_v21  ;;  %658 = vmatprep.mubr.msk.f32.mxu0 %vm772_vm0, %v771_v0 }
  0x46   :  { %663 = vmatprep.subr.mxu1 %v771_v0  ;;  %659 = vmatmul.mubr.f32.vlgmr.msra.gmra.mxu0 %v830_v20 }
  0x47   :  { %664 = vmatpush3.msra.mxu1 %v816_v5  ;;  %669 = vmatprep.mubr.msk.f32.mxu1 %vm772_vm0, %v771_v0 }
  0x48   :  { %665 = vmatprep.subr.mxu1 %v771_v0 }
  0x49   :  { %666 = vmatpush3.msra.mxu1 %v818_v6 }
  0x4a   :  { %667 = vmatprep.subr.mxu1 %v771_v0 }
  0x4b   :  { %668 = vmatpush3.msra.mxu1 %v820_v9 }
  0x4c   :  { %670 = vmatmul.mubr.f32.vlgmr.msra.gmra.mxu1 %v830_v20 }
  0xf5   :  { %v148_v34 = vpop.f32.mrf.mxu0 }
  0xf6   :  { %v149_v39 = vadd.f32 %v575_v38, %v148_v34 }
  0xf7   :  { %v616_v35 = vpop.f32.mrf.mxu0  ;;  %v239_v36 = vpop.f32.mrf.mxu1 }
  0xf8   :  { %v240_v42 = vadd.f32 %v239_v36, %v149_v39 }
  0xf9   :  { %v627_v37 = vpop.f32.mrf.mxu1 }
  0xfd   :  { %v319_v40 = vpop.f32.mrf.mxu0 }
  0xfe   :  { %v320_v45 = vadd.f32 %v319_v40, %v240_v42 }
  0xff   :  { %v638_v41 = vpop.f32.mrf.mxu0 }
 0x102   :  { %v396_v43 = vpop.f32.mrf.mxu1 }
 0x103   :  { %v397_v47 = vadd.f32 %v396_v43, %v320_v45 }
 0x104   :  { %v649_v44 = vpop.f32.mrf.mxu1 }
 0x106   :  { %v479_v46 = vpop.f32.mrf.mxu0 }
 0x107   :  { %v480_v49 = vadd.f32 %v479_v46, %v397_v47 }
 0x108   :  { %v660_v48 = vpop.f32.mrf.mxu0 }
 0x10c   :  { %v554_v50 = vpop.f32.mrf.mxu1 }
 0x10d   :  { %v555_v51 = vadd.f32 %v554_v50, %v480_v49 }
 0x10e   :  { %v671_v52 = vpop.f32.mrf.mxu1 }
 0x10f   :  { %558 = vst [vmem:[#allocation8] sm:$0x3] %v555_v51 }
 0x110   :  { %751 = shalt.err (!%p748_p5)
}
 0x111   :  { %568 = dma.vmem_to_hbm [thread:$0]  %s566_s6, 32, %s884_s4, [#allocation4]  }
 0x112   :  { %764 = dma.done.wait [#allocation4], 32  }
 0x113   :  { %765 = vsyncadd [#allocation4], 4294967264 }
 0x114   :  { %572 = vsyncpa [#allocation3], 1 }
 0x115   :  { %573 = vsyncpa [#allocation6], 1 }
 0x116   :  { %574 = vsyncpa [#allocation4], 1 }

</bundles_post_ra>
